<compile_context>
chip_gen: v6e
topology: v6e:2x2x1
jax: 0.10.0
libtpu: 0.0.40
codegen_flags: <defaults>
</compile_context>

<pallas_src>
import jax
import jax.numpy as jnp
import numpy as np
from jax.experimental import pallas as pl
from jax.experimental.pallas import tpu as pltpu

# ---- model dimensions (small synthetic config) -------------------------------
DIM = 16                       # input / output feature dim
LAYER_SIZES = (32, 64, 32)     # "default_layer_sizes"
LATENT = LAYER_SIZES[-1]       # 32
BATCH = 20                     # deliberately not a multiple of the row tile

PAD = 128                      # lane padding: every feature axis is 128 wide
N_WEIGHTS = 8                  # enc(3) + mean + logvar + dec(3)
N_BIASES = 6                   # enc(3) + dec(3)


def _round_up(n, m):
    return ((n + m - 1) // m) * m


# ------------------------------ kernel ---------------------------------------
def _cvae_kernel(x_ref, noise_ref, w_ref, b_ref, out_ref):
    """One batch tile of the full CVAE forward.

    x_ref, noise_ref, out_ref : (b_tile, 128) f32   (lane-padded)
    w_ref : (8, 128, 128)  compute dtype (zero-padded weights, (in,out) layout)
    b_ref : (6, 1, 128)    f32            (zero-padded biases)
    """
    f32 = jnp.float32

    def dense(h, wi, bi=None, relu=False):
        w = w_ref[wi]                                   # (128, 128), MXU dtype
        y = jnp.dot(h.astype(w.dtype), w, preferred_element_type=f32)
        if bi is not None:
            y = y + b_ref[bi]                           # (1, 128) f32 broadcast
        if relu:
            y = jnp.maximum(y, 0.0)
        return y

    # ---------------- encoder MLP: DIM -> 32 -> 64 -> 32 (padded to 128) ------
    h = x_ref[...]
    h = dense(h, 0, 0, relu=True)
    h = dense(h, 1, 1, relu=True)
    encoded = dense(h, 2, 2)

    # ------ to_mean_log_variance as two aligned dots (no lane slicing) --------
    mean = dense(encoded, 3)
    log_variance = dense(encoded, 4)

    # ---------------- reparameterization (f32 elementwise) --------------------
    std = jnp.exp(0.5 * log_variance)
    z = mean + std * noise_ref[...]

    # ---------------- decoder MLP: 32 -> 64 -> 32 -> DIM ----------------------
    d = dense(z, 5, 3, relu=True)
    d = dense(d, 6, 4, relu=True)
    recon = dense(d, 7, 5)

    out_ref[...] = recon.astype(out_ref.dtype)


# ------------------------- parameter packing ----------------------------------
def pack_params(params, compute_dtype):
    """Pack the 13 per-layer tensors into 2 lane-padded slabs."""
    (we0, be0, we1, be1, we2, be2, wmv,
     wd0, bd0, wd1, bd1, wd2, bd2) = params
    w_mean = wmv[:, :LATENT]
    w_logv = wmv[:, LATENT:]
    weights = [we0, we1, we2, w_mean, w_logv, wd0, wd1, wd2]
    biases = [be0, be1, be2, bd0, bd1, bd2]

    w_slab = jnp.zeros((N_WEIGHTS, PAD, PAD), compute_dtype)
    for i, w in enumerate(weights):
        w_slab = w_slab.at[i, : w.shape[0], : w.shape[1]].set(
            w.astype(compute_dtype))

    b_slab = jnp.zeros((N_BIASES, 1, PAD), jnp.float32)
    for i, b in enumerate(biases):
        b_slab = b_slab.at[i, :, : b.shape[1]].set(b.astype(jnp.float32))
    return w_slab, b_slab


# ------------------------------ wrapper ---------------------------------------
def cvae_forward(x, noise, params, *, compute_dtype=jnp.bfloat16, b_tile=None):
    """x: (B, DIM) f32, noise: (B, LATENT) f32, params: flat list of arrays."""
    B = x.shape[0]
    w_slab, b_slab = pack_params(params, compute_dtype)

    # Lane-pad activations to 128 lanes (zeros in the padding lanes flow through
    # the zero-padded weights, so the math is unchanged).
    xp = jnp.zeros((B, PAD), jnp.float32).at[:, : x.shape[1]].set(
        x.astype(jnp.float32))
    np_ = jnp.zeros((B, PAD), jnp.float32).at[:, : noise.shape[1]].set(
        noise.astype(jnp.float32))

    # Row tile: big at scale, just round up to 8 sublanes for tiny batches.
    if b_tile is None:
        b_tile = 512 if B >= 512 else _round_up(B, 8)
    b_tile = max(8, _round_up(b_tile, 8))
    Bp = _round_up(B, b_tile)
    if Bp != B:
        xp = jnp.pad(xp, ((0, Bp - B), (0, 0)))
        np_ = jnp.pad(np_, ((0, Bp - B), (0, 0)))

    row_spec = pl.BlockSpec((b_tile, PAD), lambda i: (i, 0))
    out = pl.pallas_call(
        _cvae_kernel,
        out_shape=jax.ShapeDtypeStruct((Bp, PAD), jnp.float32),
        grid=(Bp // b_tile,),
        in_specs=[
            row_spec,                                            # x tile
            row_spec,                                            # noise tile
            pl.BlockSpec((N_WEIGHTS, PAD, PAD), lambda i: (0, 0, 0)),  # weights
            pl.BlockSpec((N_BIASES, 1, PAD), lambda i: (0, 0, 0)),     # biases
        ],
        out_specs=row_spec,
        compiler_params=pltpu.CompilerParams(
            dimension_semantics=("parallel",)),
    )(xp, np_, w_slab, b_slab)

    return out[:B, :DIM]


# ---------------- deterministic parameter construction ------------------------
def _linear_params(key, d_in, d_out, bias=True):
    kw, kb = jax.random.split(key)
    scale = 1.0 / np.sqrt(d_in)
    w = jax.random.uniform(kw, (d_in, d_out), jnp.float32, -scale, scale)
    if not bias:
        return (w,)
    b = jax.random.uniform(kb, (1, d_out), jnp.float32, -scale, scale)
    return (w, b)


def make_params(key):
    keys = jax.random.split(key, 7)
    enc_dims = (DIM,) + LAYER_SIZES                  # 16, 32, 64, 32
    dec_dims = LAYER_SIZES + (DIM,)                  # 32, 64, 32, 16
    params = []
    for i in range(3):                               # encoder
        params += list(_linear_params(keys[i], enc_dims[i], enc_dims[i + 1]))
    params += list(_linear_params(keys[3], LATENT, 2 * LATENT, bias=False))
    for i in range(3):                               # decoder
        params += list(_linear_params(keys[4 + i], dec_dims[i], dec_dims[i + 1]))
    return params


# ------------------------------ reference -------------------------------------
def cvae_reference(x, noise, params, compute_dtype=jnp.float32):
    (we0, be0, we1, be1, we2, be2, wmv,
     wd0, bd0, wd1, bd1, wd2, bd2) = params

    def mm(a, w):
        return jnp.dot(a.astype(compute_dtype), w.astype(compute_dtype),
                       preferred_element_type=jnp.float32)

    h = jnp.maximum(mm(x, we0) + be0, 0.0)
    h = jnp.maximum(mm(h, we1) + be1, 0.0)
    enc = mm(h, we2) + be2
    mv = mm(enc, wmv)
    mean, logv = mv[:, :LATENT], mv[:, LATENT:]
    z = mean + jnp.exp(0.5 * logv) * noise
    d = jnp.maximum(mm(z, wd0) + bd0, 0.0)
    d = jnp.maximum(mm(d, wd1) + bd1, 0.0)
    return mm(d, wd2) + bd2


if __name__ == "__main__":
    key = jax.random.PRNGKey(0)
    k_x, k_n, k_p = jax.random.split(key, 3)

    x = jax.random.normal(k_x, (BATCH, DIM), jnp.float32)
    noise = jax.random.normal(k_n, (BATCH, LATENT), jnp.float32)
    params = make_params(k_p)

    # f32 MXU operands, small row tile to exercise the multi-tile batch grid
    # (BATCH=20 -> padded to 24 rows -> 3 grid steps with resident weights).
    recon_f32 = jax.block_until_ready(
        cvae_forward(x, noise, params, compute_dtype=jnp.float32, b_tile=8))
    ref_f32 = cvae_reference(x, noise, params, jnp.float32)
    np.testing.assert_allclose(np.asarray(recon_f32), np.asarray(ref_f32),
                               rtol=1e-5, atol=1e-5)

    # bf16 MXU operands (v6e/v7x path), f32 accumulation + f32 elementwise,
    # compared against a reference that applies the same bf16 casts.
    recon_bf16 = jax.block_until_ready(
        cvae_forward(x, noise, params, compute_dtype=jnp.bfloat16, b_tile=8))
    ref_bf16 = cvae_reference(x, noise, params, jnp.bfloat16)
    np.testing.assert_allclose(np.asarray(recon_bf16), np.asarray(ref_bf16),
                               rtol=3e-2, atol=3e-2)

    print("KERNEL_OK")
</pallas_src>

<mosaic_0001>
module attributes {stable_mosaic.version = 11 : i64} {
  func.func @_cvae_kernel(%arg0: i32, %arg1: memref<8x128xf32, #tpu.memory_space<vmem>>, %arg2: memref<8x128xf32, #tpu.memory_space<vmem>>, %arg3: memref<8x128x128xf32, #tpu.memory_space<vmem>>, %arg4: memref<6x1x128xf32, #tpu.memory_space<vmem>>, %arg5: memref<8x128xf32, #tpu.memory_space<vmem>>) attributes {dimension_semantics = [#tpu.dimension_semantics<parallel>], iteration_bounds = array<i64: 3>, scalar_prefetch = 0 : i64, scratch_operands = 0 : i64, tpu.core_type = #tpu.core_type<tc>, window_params = [{transform_indices = @transform_0, window_bounds = array<i64: 8, 128>}, {transform_indices = @transform_1, window_bounds = array<i64: 8, 128>}, {pipeline_mode = #tpu.pipeline_mode<synchronous>, transform_indices = @transform_2, window_bounds = array<i64: 8, 128, 128>}, {pipeline_mode = #tpu.pipeline_mode<synchronous>, transform_indices = @transform_3, window_bounds = array<i64: 6, 1, 128>}, {transform_indices = @transform_4, window_bounds = array<i64: 8, 128>}]} {
    %c0 = arith.constant 0 : index
    %c0_0 = arith.constant 0 : index
    %0 = vector.load %arg1[%c0, %c0_0] : memref<8x128xf32, #tpu.memory_space<vmem>>, vector<8x128xf32>
    %c0_1 = arith.constant 0 : index
    %c0_2 = arith.constant 0 : index
    %c0_3 = arith.constant 0 : index
    %1 = vector.load %arg3[%c0_1, %c0_2, %c0_3] : memref<8x128x128xf32, #tpu.memory_space<vmem>>, vector<1x128x128xf32>
    %2 = vector.shape_cast %1 : vector<1x128x128xf32> to vector<128x128xf32>
    %cst = arith.constant dense<0.000000e+00> : vector<8x128xf32>
    %3 = tpu.matmul %0, %2, %cst {dimension_numbers = #tpu.dot_dimension_numbers<[1], [0], [0], [1], [0, 0, 1, 1], [], []>} : vector<8x128xf32>, vector<128x128xf32>, vector<8x128xf32> -> vector<8x128xf32>
    %c0_4 = arith.constant 0 : index
    %c0_5 = arith.constant 0 : index
    %c0_6 = arith.constant 0 : index
    %4 = vector.load %arg4[%c0_4, %c0_5, %c0_6] : memref<6x1x128xf32, #tpu.memory_space<vmem>>, vector<1x1x128xf32>
    %5 = vector.shape_cast %4 : vector<1x1x128xf32> to vector<1x128xf32>
    %6 = vector.broadcast %5 : vector<1x128xf32> to vector<8x128xf32>
    %7 = arith.addf %3, %6 : vector<8x128xf32>
    %cst_7 = arith.constant 0.000000e+00 : f32
    %8 = vector.broadcast %cst_7 : f32 to vector<8x128xf32>
    %9 = arith.maximumf %7, %8 : vector<8x128xf32>
    %c1 = arith.constant 1 : index
    %c0_8 = arith.constant 0 : index
    %c0_9 = arith.constant 0 : index
    %10 = vector.load %arg3[%c1, %c0_8, %c0_9] : memref<8x128x128xf32, #tpu.memory_space<vmem>>, vector<1x128x128xf32>
    %11 = vector.shape_cast %10 : vector<1x128x128xf32> to vector<128x128xf32>
    %cst_10 = arith.constant dense<0.000000e+00> : vector<8x128xf32>
    %12 = tpu.matmul %9, %11, %cst_10 {dimension_numbers = #tpu.dot_dimension_numbers<[1], [0], [0], [1], [0, 0, 1, 1], [], []>} : vector<8x128xf32>, vector<128x128xf32>, vector<8x128xf32> -> vector<8x128xf32>
    %c1_11 = arith.constant 1 : index
    %c0_12 = arith.constant 0 : index
    %c0_13 = arith.constant 0 : index
    %13 = vector.load %arg4[%c1_11, %c0_12, %c0_13] : memref<6x1x128xf32, #tpu.memory_space<vmem>>, vector<1x1x128xf32>
    %14 = vector.shape_cast %13 : vector<1x1x128xf32> to vector<1x128xf32>
    %15 = vector.broadcast %14 : vector<1x128xf32> to vector<8x128xf32>
    %16 = arith.addf %12, %15 : vector<8x128xf32>
    %cst_14 = arith.constant 0.000000e+00 : f32
    %17 = vector.broadcast %cst_14 : f32 to vector<8x128xf32>
    %18 = arith.maximumf %16, %17 : vector<8x128xf32>
    %c2 = arith.constant 2 : index
    %c0_15 = arith.constant 0 : index
    %c0_16 = arith.constant 0 : index
    %19 = vector.load %arg3[%c2, %c0_15, %c0_16] : memref<8x128x128xf32, #tpu.memory_space<vmem>>, vector<1x128x128xf32>
    %20 = vector.shape_cast %19 : vector<1x128x128xf32> to vector<128x128xf32>
    %cst_17 = arith.constant dense<0.000000e+00> : vector<8x128xf32>
    %21 = tpu.matmul %18, %20, %cst_17 {dimension_numbers = #tpu.dot_dimension_numbers<[1], [0], [0], [1], [0, 0, 1, 1], [], []>} : vector<8x128xf32>, vector<128x128xf32>, vector<8x128xf32> -> vector<8x128xf32>
    %c2_18 = arith.constant 2 : index
    %c0_19 = arith.constant 0 : index
    %c0_20 = arith.constant 0 : index
    %22 = vector.load %arg4[%c2_18, %c0_19, %c0_20] : memref<6x1x128xf32, #tpu.memory_space<vmem>>, vector<1x1x128xf32>
    %23 = vector.shape_cast %22 : vector<1x1x128xf32> to vector<1x128xf32>
    %24 = vector.broadcast %23 : vector<1x128xf32> to vector<8x128xf32>
    %25 = arith.addf %21, %24 : vector<8x128xf32>
    %c3 = arith.constant 3 : index
    %c0_21 = arith.constant 0 : index
    %c0_22 = arith.constant 0 : index
    %26 = vector.load %arg3[%c3, %c0_21, %c0_22] : memref<8x128x128xf32, #tpu.memory_space<vmem>>, vector<1x128x128xf32>
    %27 = vector.shape_cast %26 : vector<1x128x128xf32> to vector<128x128xf32>
    %cst_23 = arith.constant dense<0.000000e+00> : vector<8x128xf32>
    %28 = tpu.matmul %25, %27, %cst_23 {dimension_numbers = #tpu.dot_dimension_numbers<[1], [0], [0], [1], [0, 0, 1, 1], [], []>} : vector<8x128xf32>, vector<128x128xf32>, vector<8x128xf32> -> vector<8x128xf32>
    %c4 = arith.constant 4 : index
    %c0_24 = arith.constant 0 : index
    %c0_25 = arith.constant 0 : index
    %29 = vector.load %arg3[%c4, %c0_24, %c0_25] : memref<8x128x128xf32, #tpu.memory_space<vmem>>, vector<1x128x128xf32>
    %30 = vector.shape_cast %29 : vector<1x128x128xf32> to vector<128x128xf32>
    %cst_26 = arith.constant dense<0.000000e+00> : vector<8x128xf32>
    %31 = tpu.matmul %25, %30, %cst_26 {dimension_numbers = #tpu.dot_dimension_numbers<[1], [0], [0], [1], [0, 0, 1, 1], [], []>} : vector<8x128xf32>, vector<128x128xf32>, vector<8x128xf32> -> vector<8x128xf32>
    %cst_27 = arith.constant 5.000000e-01 : f32
    %32 = vector.broadcast %cst_27 : f32 to vector<8x128xf32>
    %33 = arith.mulf %32, %31 : vector<8x128xf32>
    %34 = math.exp %33 : vector<8x128xf32>
    %c0_28 = arith.constant 0 : index
    %c0_29 = arith.constant 0 : index
    %35 = vector.load %arg2[%c0_28, %c0_29] : memref<8x128xf32, #tpu.memory_space<vmem>>, vector<8x128xf32>
    %36 = arith.mulf %34, %35 : vector<8x128xf32>
    %37 = arith.addf %28, %36 : vector<8x128xf32>
    %c5 = arith.constant 5 : index
    %c0_30 = arith.constant 0 : index
    %c0_31 = arith.constant 0 : index
    %38 = vector.load %arg3[%c5, %c0_30, %c0_31] : memref<8x128x128xf32, #tpu.memory_space<vmem>>, vector<1x128x128xf32>
    %39 = vector.shape_cast %38 : vector<1x128x128xf32> to vector<128x128xf32>
    %cst_32 = arith.constant dense<0.000000e+00> : vector<8x128xf32>
    %40 = tpu.matmul %37, %39, %cst_32 {dimension_numbers = #tpu.dot_dimension_numbers<[1], [0], [0], [1], [0, 0, 1, 1], [], []>} : vector<8x128xf32>, vector<128x128xf32>, vector<8x128xf32> -> vector<8x128xf32>
    %c3_33 = arith.constant 3 : index
    %c0_34 = arith.constant 0 : index
    %c0_35 = arith.constant 0 : index
    %41 = vector.load %arg4[%c3_33, %c0_34, %c0_35] : memref<6x1x128xf32, #tpu.memory_space<vmem>>, vector<1x1x128xf32>
    %42 = vector.shape_cast %41 : vector<1x1x128xf32> to vector<1x128xf32>
    %43 = vector.broadcast %42 : vector<1x128xf32> to vector<8x128xf32>
    %44 = arith.addf %40, %43 : vector<8x128xf32>
    %cst_36 = arith.constant 0.000000e+00 : f32
    %45 = vector.broadcast %cst_36 : f32 to vector<8x128xf32>
    %46 = arith.maximumf %44, %45 : vector<8x128xf32>
    %c6 = arith.constant 6 : index
    %c0_37 = arith.constant 0 : index
    %c0_38 = arith.constant 0 : index
    %47 = vector.load %arg3[%c6, %c0_37, %c0_38] : memref<8x128x128xf32, #tpu.memory_space<vmem>>, vector<1x128x128xf32>
    %48 = vector.shape_cast %47 : vector<1x128x128xf32> to vector<128x128xf32>
    %cst_39 = arith.constant dense<0.000000e+00> : vector<8x128xf32>
    %49 = tpu.matmul %46, %48, %cst_39 {dimension_numbers = #tpu.dot_dimension_numbers<[1], [0], [0], [1], [0, 0, 1, 1], [], []>} : vector<8x128xf32>, vector<128x128xf32>, vector<8x128xf32> -> vector<8x128xf32>
    %c4_40 = arith.constant 4 : index
    %c0_41 = arith.constant 0 : index
    %c0_42 = arith.constant 0 : index
    %50 = vector.load %arg4[%c4_40, %c0_41, %c0_42] : memref<6x1x128xf32, #tpu.memory_space<vmem>>, vector<1x1x128xf32>
    %51 = vector.shape_cast %50 : vector<1x1x128xf32> to vector<1x128xf32>
    %52 = vector.broadcast %51 : vector<1x128xf32> to vector<8x128xf32>
    %53 = arith.addf %49, %52 : vector<8x128xf32>
    %cst_43 = arith.constant 0.000000e+00 : f32
    %54 = vector.broadcast %cst_43 : f32 to vector<8x128xf32>
    %55 = arith.maximumf %53, %54 : vector<8x128xf32>
    %c7 = arith.constant 7 : index
    %c0_44 = arith.constant 0 : index
    %c0_45 = arith.constant 0 : index
    %56 = vector.load %arg3[%c7, %c0_44, %c0_45] : memref<8x128x128xf32, #tpu.memory_space<vmem>>, vector<1x128x128xf32>
    %57 = vector.shape_cast %56 : vector<1x128x128xf32> to vector<128x128xf32>
    %cst_46 = arith.constant dense<0.000000e+00> : vector<8x128xf32>
    %58 = tpu.matmul %55, %57, %cst_46 {dimension_numbers = #tpu.dot_dimension_numbers<[1], [0], [0], [1], [0, 0, 1, 1], [], []>} : vector<8x128xf32>, vector<128x128xf32>, vector<8x128xf32> -> vector<8x128xf32>
    %c5_47 = arith.constant 5 : index
    %c0_48 = arith.constant 0 : index
    %c0_49 = arith.constant 0 : index
    %59 = vector.load %arg4[%c5_47, %c0_48, %c0_49] : memref<6x1x128xf32, #tpu.memory_space<vmem>>, vector<1x1x128xf32>
    %60 = vector.shape_cast %59 : vector<1x1x128xf32> to vector<1x128xf32>
    %61 = vector.broadcast %60 : vector<1x128xf32> to vector<8x128xf32>
    %62 = arith.addf %58, %61 : vector<8x128xf32>
    %c0_50 = arith.constant 0 : index
    %c0_51 = arith.constant 0 : index
    %63 = vector.load %arg5[%c0_50, %c0_51] : memref<8x128xf32, #tpu.memory_space<vmem>>, vector<8x128xf32>
    tpu.vector_store %arg5[%c0_50, %c0_51], %62 {strides = array<i32>} : memref<8x128xf32, #tpu.memory_space<vmem>>, vector<8x128xf32>,
    return
  }
  func.func @transform_0(%arg0: i32) -> (i32, i32) {
    %c0_i32 = arith.constant 0 : i32
    %c0_i32_0 = arith.constant 0 : i32
    return %arg0, %c0_i32 : i32, i32
  }
  func.func @transform_1(%arg0: i32) -> (i32, i32) {
    %c0_i32 = arith.constant 0 : i32
    %c0_i32_0 = arith.constant 0 : i32
    return %arg0, %c0_i32 : i32, i32
  }
  func.func @transform_2(%arg0: i32) -> (i32, i32, i32) {
    %c0_i32 = arith.constant 0 : i32
    %c0_i32_0 = arith.constant 0 : i32
    %c0_i32_1 = arith.constant 0 : i32
    %c0_i32_2 = arith.constant 0 : i32
    return %c0_i32, %c0_i32_0, %c0_i32_1 : i32, i32, i32
  }
  func.func @transform_3(%arg0: i32) -> (i32, i32, i32) {
    %c0_i32 = arith.constant 0 : i32
    %c0_i32_0 = arith.constant 0 : i32
    %c0_i32_1 = arith.constant 0 : i32
    %c0_i32_2 = arith.constant 0 : i32
    return %c0_i32, %c0_i32_0, %c0_i32_1 : i32, i32, i32
  }
  func.func @transform_4(%arg0: i32) -> (i32, i32) {
    %c0_i32 = arith.constant 0 : i32
    %c0_i32_0 = arith.constant 0 : i32
    return %arg0, %c0_i32 : i32, i32
  }
}

</mosaic_0001>

<bundles_post_ra>
// kernel: tpu_custom_call.1
= control target key start
LH: loop header
LB: loop body
LE: loop exit
PB: predicated region body
PF: predicated region fallthrough
CT: control target
= control target key end

     0   :  { %s2274_s0 = inlined_call_operand.hbm [shape: f32[24,128], index: 0, kind: input, shape index: {}]   ;;  %s2275_s1 = inlined_call_operand.hbm [shape: f32[24,128], index: 1, kind: input, shape index: {}]   ;;  %s2276_s2 = inlined_call_operand.hbm [shape: f32[8,128,128], index: 2, kind: input, shape index: {}]   ;;  %s2277_s3 = inlined_call_operand.hbm [shape: f32[6,1,128], index: 3, kind: input, shape index: {}]   ;;  %s2278_s4 = inlined_call_operand.hbm [shape: f32[24,128], index: 4, kind: output, shape index: {}]  }
   0x1   :  { %2283 = sst [smem:[#allocation16_spill]] %s2276_s2 }
   0x2   :  { %9 = vsyncpa [#allocation3], 0 }
   0x3   :  { %11 = vsyncpa [#allocation3 + $0x1], 0 }
   0x4   :  { %12 = vsyncpa [#allocation6], 0 }
   0x5   :  { %14 = vsyncpa [#allocation6 + $0x1], 0 }
   0x6   :  { %15 = vsyncpa [#allocation9], 0 }
   0x7   :  { %16 = vsyncpa [#allocation4], 0 }
   0x8   :  { %18 = vsyncpa [#allocation4 + $0x1], 0  ;;  %s1901_s15 = smov 0   ;;  %s1903_s16 = smov 0  }
   0x9   :  { %s1905_s17 = smov 0   ;;  %s1907_s18 = smov 0  }
   0xa LB: > { %s1922_s19 = sadd.s32 4294967295, %s1863_s18   ;;  %s1158_s20 = sadd.s32 4294967294, %s1863_s18   ;;  %s1863_s18 = sphi %s1907_s18, %s2303_s18   ;;  %s1859_s17 = sphi %s1905_s17, %s2302_s17   ;;  %s1855_s16 = sphi %s1903_s16, %s2301_s16   ;;  %s1851_s15 = sphi %s1901_s15, %s2300_s15  }
   0xb   : > { %p44_p0 = scmp.ne.s32.totalorder %s1855_s16, %s1851_s15  ;;  %p2279_p1 = scmp.eq.s32.totalorder %s1922_s19, 0 }
   0xc   : > { %p142_p3 = scmp.eq.s32.totalorder %s1158_s20, 2  ;;  %p1159_p5 = scmp.ge.s32.totalorder %s1863_s18, 1 }
   0xd   : > { %p1931_p4 = por %p2279_p1, %p44_p0  ;;  %p149_p7 = scmp.lt.s32.totalorder %s1863_s18, 4 }
   0xe   : > { %p1936_p6 = por %p142_p3, %p44_p0  ;;  %s1865_s24 = smov [#allocation7]  }
   0xf   : > { %s2284_s21 = scalar_select %p1931_p4, 1, 0 }
  0x10   : > { %s2285_s22 = scalar_select %p1936_p6, 1, 0 }
  0x11   : > { %p1941_p8 = pnand %p1159_p5, %p149_p7  ;;  %s161_s25 = sshll.u32 %s1865_s24, 4  ;;  %s162_s25 = int_to_ptr.vmem [resolvable:$true] %s161_s25 }
  0x12   : > { %s1866_s27 = smov [#allocation8]   ;;  %s1690_s29 = scalar_lea.vmem %s162_s25, 16384 }
  0x13   : > { %s2286_s23 = scalar_select %p1941_p8, 1, 0 }
  0x14   : > { %p1613_p9 = pneg %p1941_p8  ;;  %s174_s28 = sshll.u32 %s1866_s27, 4  ;;  %s175_s28 = int_to_ptr.vmem [resolvable:$true] %s174_s28 }
  0x15   : > { %p1691_p12 = scmp.ne.s32.totalorder %s162_s25, %s1690_s29  ;;  %p1698_p3 = scmp.lt.s32.totalorder %s162_s25, %s162_s25 }
  0x16   : > { %p1949_p10 = pnand %p1613_p9, %p2279_p1  ;;  %p1699_p5 = scmp.lt.s32.totalorder %s1690_s29, %s1690_s29 }
  0x18   : > { %p1681_p11 = pneg %p1949_p10  ;;  %p1700_p7 = por %p1699_p5, %p1698_p3 }
  0x1a   : > { %p1693_p13 = pnand %p1691_p12, %p1681_p11 }
  0x1c   : > { %p1694_p0 = pneg %p1693_p13 }
  0x1e   : > { %p1701_p9 = pnand %p1700_p7, %p1694_p0 }
  0x20   : > { %1704 = shalt.err (!%p1701_p9)
}
  0x21   : > { %s1867_s30 = smov 128   ;;  %s1868_s5 = smov 8  }
  0x22   : > { %s2288_s2 = sld [smem:[#allocation16_spill]]  ;;  %s1716_s8 = scalar_lea.vmem %s175_s28, 96 }
  0x23   : > { %p1717_p1 = scmp.ne.s32.totalorder %s175_s28, %s1716_s8  ;;  %p1724_p2 = scmp.lt.s32.totalorder %s175_s28, %s175_s28 }
  0x24   : > { %p1725_p6 = scmp.lt.s32.totalorder %s1716_s8, %s1716_s8 }
  0x25   : > { %p1719_p12 = pnand %p1717_p1, %p1681_p11 }
  0x26   : > { %p1726_p3 = por %p1725_p6, %p1724_p2 }
  0x27   : > { %p1720_p13 = pneg %p1719_p12 }
  0x28   : > { %1616 = dma.hbm_to_vmem [thread:$0]  (!%p1949_p10), %s2288_s2, 16384, %s162_s25, [#allocation6], %s1867_s30, %s1867_s30, %s1868_s5  }
  0x29   : > { %p1727_p0 = pnand %p1726_p3, %p1720_p13 }
  0x2b   : > { %1730 = shalt.err (!%p1727_p0)
}
  0x2c   : > { %s1869_s9 = smov 16   ;;  %s1870_s10 = smov 1  }
  0x2d   : > { %1619 = dma.hbm_to_vmem [thread:$0]  (!%p1949_p10), %s2277_s3, 96, %s175_s28, [#allocation9], %s1869_s9, %s1869_s9, %s1870_s10  }
  0x2e   : > { %s1972_s13 = sadd.s32 1, %s1863_s18   ;;  %s31_s20 = sadd.s32 1, %s1859_s17 }
  0x2f   : > { %s28_s14 = ssub.s32 %s1863_s18, %s1972_s13  ;;  %p38_p2 = scmp.ne.s32.totalorder %s1859_s17, %s1855_s16 }
  0x30   : > { %p29_p1 = scmp.eq.s32.totalorder %s28_s14, 0  ;;  %p39_p6 = scmp.eq.s32.totalorder %s1863_s18, 0 }
  0x31   : > { %p2289_p5 = scmp.eq.s32.totalorder %s1922_s19, 2  ;;  %p1633_p9 = scmp.lt.s32.totalorder %s1863_s18, 3 }
  0x32   : > { %s1981_s24 = scalar_select %p29_p1, %s1859_s17, %s31_s20  }
  0x33   : > { %p40_p11 = por %p39_p6, %p38_p2  ;;  %p1985_p7 = por %p2289_p5, %p38_p2 }
  0x34   : > { %s188_s26 = sand.u32 1, %s1859_s17   ;;  %s1164_s28 = sshll.u32 %s1863_s18, 7 }
  0x35   : > { %s2290_s25 = scalar_select %p1985_p7, 1, 0 }
  0x36   : > { %s1991_s27 = sshll.u32 %s188_s26, 3  ;;  %s1997_s5 = scalar_lea.hbm %s2274_s0, %s1164_s28 }
  0x37   : > { %s192_s6 = scalar_lea.vmem [#allocation2], %s1991_s27  ;;  %p2002_p10 = pnand %p1633_p9, %p40_p11 }
  0x38   : > { %s199_s7 = sshll.u32 %s192_s6, 4  ;;  %s2009_s11 = scalar_lea.hbm %s2275_s1, %s1164_s28  ;;  %s2000_s7 = int_to_ptr.vmem [resolvable:$true] %s199_s7 }
  0x39   : > { %s206_s12 = sand.u32 1, %s1863_s18   ;;  %s189_s14 = scalar_lea.sflag [#allocation3], %s188_s26 }
  0x3a   : > { %s1731_s20 = scalar_lea.hbm %s1997_s5, 128  ;;  %p1733_p13 = pneg %p2002_p10 }
  0x3b   : > { %p1732_p12 = scmp.ne.s32.totalorder %s1997_s5, %s1731_s20  ;;  %s1736_s6 = scalar_lea.hbm %s2274_s0, 384 }
  0x3c   : > { %p1737_p1 = scmp.lt.s32.totalorder %s1997_s5, %s2274_s0  ;;  %p1738_p2 = scmp.lt.s32.totalorder %s1736_s6, %s1731_s20 }
  0x3d   : > { %p1734_p3 = pnand %p1733_p13, %p1732_p12 }
  0x3e   : > { %p1739_p6 = por %p1738_p2, %p1737_p1 }
  0x3f   : > { %p1735_p0 = pneg %p1734_p3 }
  0x41   : > { %p1740_p11 = pnand %p1739_p6, %p1735_p0 }
  0x43   : > { %1743 = shalt.err (!%p1740_p11)
}
  0x44   : > { %s1744_s26 = scalar_lea.vmem %s2000_s7, 128  ;;  %s1871_s28 = smov [#allocation2]  }
  0x45   : > { %p1745_p5 = scmp.ne.s32.totalorder %s2000_s7, %s1744_s26  ;;  %s1749_s10 = sshll.u32 %s1871_s28, 4  ;;  %s1750_s10 = int_to_ptr.vmem [resolvable:$false] %s1749_s10 }
  0x46   : > { %s1751_s29 = scalar_lea.vmem %s1750_s10, 256  ;;  %p1752_p3 = scmp.lt.s32.totalorder %s2000_s7, %s1750_s10 }
  0x47   : > { %p1747_p9 = pnand %p1745_p5, %p1733_p13  ;;  %p1753_p7 = scmp.lt.s32.totalorder %s1751_s29, %s1744_s26 }
  0x49   : > { %p1748_p12 = pneg %p1747_p9  ;;  %p1754_p4 = por %p1753_p7, %p1752_p3 }
  0x4b   : > { %p1755_p1 = pnand %p1754_p4, %p1748_p12 }
  0x4d   : > { %1758 = shalt.err (!%p1755_p1)
}
  0x4e   : > { %1623 = dma.hbm_to_vmem [thread:$0]  (!%p2002_p10), %s1997_s5, 128, %s2000_s7, %s189_s14  }
  0x4f   : > { %s210_s2 = scalar_lea.vmem [#allocation5], %s1991_s27  ;;  %s207_s30 = scalar_lea.sflag [#allocation6], %s206_s12 }
  0x50   : > { %s217_s20 = sshll.u32 %s210_s2, 4  ;;  %s1759_s6 = scalar_lea.hbm %s2009_s11, 128  ;;  %s218_s20 = int_to_ptr.vmem [resolvable:$true] %s217_s20 }
  0x51   : > { %p1760_p7 = scmp.ne.s32.totalorder %s2009_s11, %s1759_s6  ;;  %s1764_s28 = scalar_lea.hbm %s2275_s1, 384 }
  0x52   : > { %p1765_p2 = scmp.lt.s32.totalorder %s2009_s11, %s2275_s1  ;;  %p1766_p6 = scmp.lt.s32.totalorder %s1764_s28, %s1759_s6 }
  0x53   : > { %p1762_p4 = pnand %p1760_p7, %p1733_p13 }
  0x54   : > { %p1767_p11 = por %p1766_p6, %p1765_p2 }
  0x55   : > { %p1763_p0 = pneg %p1762_p4 }
  0x57   : > { %p1768_p5 = pnand %p1767_p11, %p1763_p0 }
  0x59   : > { %1771 = shalt.err (!%p1768_p5)
}
  0x5a   : > { %s1772_s27 = scalar_lea.vmem %s218_s20, 128  ;;  %s1872_s5 = smov [#allocation5]  }
  0x5b   : > { %p1773_p9 = scmp.ne.s32.totalorder %s218_s20, %s1772_s27  ;;  %s1777_s7 = sshll.u32 %s1872_s5, 4  ;;  %s1778_s7 = int_to_ptr.vmem [resolvable:$false] %s1777_s7 }
  0x5c   : > { %s1779_s12 = scalar_lea.vmem %s1778_s7, 256  ;;  %p1780_p1 = scmp.lt.s32.totalorder %s218_s20, %s1778_s7 }
  0x5d   : > { %p1775_p12 = pnand %p1773_p9, %p1733_p13  ;;  %p1781_p7 = scmp.lt.s32.totalorder %s1779_s12, %s1772_s27 }
  0x5f   : > { %p1776_p3 = pneg %p1775_p12  ;;  %p1782_p4 = por %p1781_p7, %p1780_p1 }
  0x61   : > { %p1783_p8 = pnand %p1782_p4, %p1776_p3 }
  0x63   : > { %1786 = shalt.err (!%p1783_p8)
}
  0x64   : > { %1626 = dma.hbm_to_vmem [thread:$0]  (!%p2002_p10), %s2009_s11, 128, %s218_s20, %s207_s30  }
  0x65   : > { %p2292_p0 = scmp.ne.s32.totalorder %s2286_s23, 0 }
  0x66   : > { %s2060_s14 = sand.u32 (!%p2292_p0), 1, %s1855_s16   ;;  %p2293_p13 = scmp.ne.s32.totalorder (!%p2292_p0), %s2284_s21, 0 }
  0x67   : > { %226 = sbr.rel (%p2292_p0) target bundleno = 1558 (0x616), region = 36  ;;  %s2063_s2 = sshll.u32 (!%p2292_p0), %s2060_s14, 3 }
  0x68   : > { %s229_s6 = scalar_lea.sflag (!%p2292_p0), [#allocation3], %s2060_s14  ;;  %s232_s9 = scalar_lea.vmem (!%p2292_p0), [#allocation2], %s2063_s2 }
  0x6c   : > { %1830 = dma.done.wait (%p2293_p13), %s229_s6, 128  }
  0x6d   : > { %1832 = vsyncadd (%p2293_p13), %s229_s6, 4294967168  ;;  %s237_s23 = sand.u32 1, %s1922_s19   ;;  %s241_s11 = scalar_lea.vmem [#allocation5], %s2063_s2 }
  0x6e   : > { %s238_s8 = scalar_lea.sflag [#allocation6], %s237_s23 }
  0x6f   : > { %1834 = dma.done.wait (%p2293_p13), %s238_s8, 128  }
  0x70   : > { %1836 = vsyncadd (%p2293_p13), %s238_s8, 4294967168  ;;  %p2294_p8 = scmp.eq.s32.totalorder %s1922_s19, 0 }
  0x72   : > { %1838 = dma.done.wait (%p2294_p8), [#allocation6], 16384   ;;  %p2295_p10 = pmov %p2294_p8 }
  0x73   : > { %p2296_p2 = pmov %p2294_p8 }
  0x74   : > { %1840 = vsyncadd (%p2295_p10), [#allocation6], 4294950912 }
  0x75   : > { %1842 = dma.done.wait (%p2296_p2), [#allocation9], 96   ;;  %p2297_p6 = pmov %p2296_p2 }
  0x76   : > { %v1873_v0 = vmov 0.0   ;;  %vm1874_vm0 = vmmov 0   ;;  %v295_v1 = vld [vmem:[#allocation7 + $0x78] sm:$0xff]  ;;  %v294_v2 = vld [vmem:[#allocation7 + $0x70] sm:$0xff]  ;;  %v293_v3 = vld [vmem:[#allocation7 + $0x68] sm:$0xff]  ;;  %s1180_s21 = sshll.u32 %s1922_s19, 7 }
  0x77   : > { %1844 = vsyncadd (%p2297_p6), [#allocation9], 4294967200  ;;  %1319 = vmatprep.subr.mxu0 %v1873_v0  ;;  %1351 = vmatprep.mubr.msk.f32.mxu0 %vm1874_vm0, %v1873_v0  ;;  %v292_v4 = vld [vmem:[#allocation7 + $0x60] sm:$0xff]  ;;  %v390_v5 = vld [vmem:[#allocation7 + $0xf8] sm:$0xff]  ;;  %s278_s20 = scalar_lea.vmem [#allocation10], %s2063_s2  ;;  %s2238_s10 = scalar_lea.hbm %s2278_s4, %s1180_s21 }
  0x78   : > { %1354 = vmatprep.subr.mxu1 %v1873_v0  ;;  %1386 = vmatprep.mubr.msk.f32.mxu1 %vm1874_vm0, %v1873_v0  ;;  %v291_v6 = vld [vmem:[#allocation7 + $0x58] sm:$0xff]  ;;  %v389_v7 = vld [vmem:[#allocation7 + $0xf0] sm:$0xff]  ;;  %v388_v8 = vld [vmem:[#allocation7 + $0xe8] sm:$0xff]  ;;  %s1046_s30 = sshll.u32 %s278_s20, 4  ;;  %s1033_s29 = scalar_lea.sflag [#allocation4], %s2060_s14  ;;  %s1047_s30 = int_to_ptr.vmem [resolvable:$true] %s1046_s30 }
  0x79   : > { %1320 = vmatpush3.msra.mxu0 %v295_v1  ;;  %1355 = vmatpush3.msra.mxu1 %v390_v5  ;;  %v290_v9 = vld [vmem:[#allocation7 + $0x50] sm:$0xff]  ;;  %v387_v10 = vld [vmem:[#allocation7 + $0xe0] sm:$0xff]  ;;  %v289_v11 = vld [vmem:[#allocation7 + $0x48] sm:$0xff]  ;;  %s1787_s27 = scalar_lea.vmem %s1047_s30, 128  ;;  %p2298_p5 = scmp.ne.s32.totalorder %s2290_s25, 0 }
  0x7a   : > { %1321 = vmatprep.subr.mxu0 %v1873_v0  ;;  %1356 = vmatprep.subr.mxu1 %v1873_v0  ;;  %v386_v12 = vld [vmem:[#allocation7 + $0xd8] sm:$0xff]  ;;  %v288_v13 = vld [vmem:[#allocation7 + $0x40] sm:$0xff]  ;;  %v385_v14 = vld [vmem:[#allocation7 + $0xd0] sm:$0xff]  ;;  %p1788_p11 = scmp.ne.s32.totalorder %s1047_s30, %s1787_s27  ;;  %s1875_s5 = smov [#allocation10]  }
  0x7b   : > { %1322 = vmatpush3.msra.mxu0 %v294_v2  ;;  %1357 = vmatpush3.msra.mxu1 %v389_v7  ;;  %v287_v15 = vld [vmem:[#allocation7 + $0x38] sm:$0xff]  ;;  %v384_v16 = vld [vmem:[#allocation7 + $0xc8] sm:$0xff]  ;;  %v286_v17 = vld [vmem:[#allocation7 + $0x30] sm:$0xff]  ;;  %s1791_s19 = sshll.u32 %s1875_s5, 4  ;;  %s1792_s19 = int_to_ptr.vmem [resolvable:$false] %s1791_s19 }
  0x7c   : > { %1323 = vmatprep.subr.mxu0 %v1873_v0  ;;  %1358 = vmatprep.subr.mxu1 %v1873_v0  ;;  %v383_v18 = vld [vmem:[#allocation7 + $0xc0] sm:$0xff]  ;;  %v285_v19 = vld [vmem:[#allocation7 + $0x28] sm:$0xff]  ;;  %v382_v20 = vld [vmem:[#allocation7 + $0xb8] sm:$0xff]  ;;  %p1789_p9 = pnand %p1788_p11, %p2298_p5  ;;  %s1793_s7 = scalar_lea.vmem %s1792_s19, 256 }
  0x7d   : > { %1324 = vmatpush3.msra.mxu0 %v293_v3  ;;  %1359 = vmatpush3.msra.mxu1 %v388_v8  ;;  %v284_v21 = vld [vmem:[#allocation7 + $0x20] sm:$0xff]  ;;  %v381_v22 = vld [vmem:[#allocation7 + $0xb0] sm:$0xff]  ;;  %v283_v23 = vld [vmem:[#allocation7 + $0x18] sm:$0xff]  ;;  %p1794_p3 = scmp.lt.s32.totalorder %s1047_s30, %s1792_s19  ;;  %p1795_p1 = scmp.lt.s32.totalorder %s1793_s7, %s1787_s27 }
  0x7e   : > { %1325 = vmatprep.subr.mxu0 %v1873_v0  ;;  %1360 = vmatprep.subr.mxu1 %v1873_v0  ;;  %v380_v24 = vld [vmem:[#allocation7 + $0xa8] sm:$0xff]  ;;  %v282_v25 = vld [vmem:[#allocation7 + $0x10] sm:$0xff]  ;;  %v379_v26 = vld [vmem:[#allocation7 + $0xa0] sm:$0xff]  ;;  %p1790_p12 = pneg %p1789_p9 }
  0x7f   : > { %1326 = vmatpush3.msra.mxu0 %v292_v4  ;;  %1361 = vmatpush3.msra.mxu1 %v387_v10  ;;  %v281_v27 = vld [vmem:[#allocation7 + $0x8] sm:$0xff]  ;;  %v378_v28 = vld [vmem:[#allocation7 + $0x98] sm:$0xff]  ;;  %v280_v29 = vld [vmem:[#allocation7] sm:$0xff]  ;;  %p1796_p7 = por %p1795_p1, %p1794_p3 }
  0x80   : > { %1327 = vmatprep.subr.mxu0 %v1873_v0  ;;  %1362 = vmatprep.subr.mxu1 %v1873_v0  ;;  %v279_v30 = vld [vmem:[%s232_s9] sm:$0xff]  ;;  %v377_v31 = vld [vmem:[#allocation7 + $0x90] sm:$0xff]  ;;  %v486_v34 = vld [vmem:[#allocation7 + $0x178] sm:$0xff] }
  0x81   : > { %1328 = vmatpush3.msra.mxu0 %v291_v6  ;;  %1363 = vmatpush3.msra.mxu1 %v386_v12  ;;  %v376_v32 = vld [vmem:[#allocation7 + $0x88] sm:$0xff]  ;;  %v375_v33 = vld [vmem:[#allocation7 + $0x80] sm:$0xff]  ;;  %v485_v35 = vld [vmem:[#allocation7 + $0x170] sm:$0xff]  ;;  %p1797_p4 = pnand %p1796_p7, %p1790_p12 }
  0x82   : > { %1329 = vmatprep.subr.mxu0 %v1873_v0  ;;  %1364 = vmatprep.subr.mxu1 %v1873_v0  ;;  %v484_v36 = vld [vmem:[#allocation7 + $0x168] sm:$0xff]  ;;  %v483_v37 = vld [vmem:[#allocation7 + $0x160] sm:$0xff]  ;;  %v482_v38 = vld [vmem:[#allocation7 + $0x158] sm:$0xff] }
  0x83   : > { %1330 = vmatpush3.msra.mxu0 %v290_v9  ;;  %1365 = vmatpush3.msra.mxu1 %v385_v14  ;;  %v481_v39 = vld [vmem:[#allocation7 + $0x150] sm:$0xff]  ;;  %v480_v40 = vld [vmem:[#allocation7 + $0x148] sm:$0xff]  ;;  %v479_v41 = vld [vmem:[#allocation7 + $0x140] sm:$0xff] }
  0x84   : > { %1331 = vmatprep.subr.mxu0 %v1873_v0  ;;  %1366 = vmatprep.subr.mxu1 %v1873_v0  ;;  %v478_v42 = vld [vmem:[#allocation7 + $0x138] sm:$0xff]  ;;  %v477_v43 = vld [vmem:[#allocation7 + $0x130] sm:$0xff]  ;;  %v476_v44 = vld [vmem:[#allocation7 + $0x128] sm:$0xff] }
  0x85   : > { %1332 = vmatpush3.msra.mxu0 %v289_v11  ;;  %1367 = vmatpush3.msra.mxu1 %v384_v16  ;;  %v475_v45 = vld [vmem:[#allocation7 + $0x120] sm:$0xff]  ;;  %v474_v46 = vld [vmem:[#allocation7 + $0x118] sm:$0xff]  ;;  %v473_v52 = vld [vmem:[#allocation7 + $0x110] sm:$0xff] }
  0x86   : > { %1333 = vmatprep.subr.mxu0 %v1873_v0  ;;  %1368 = vmatprep.subr.mxu1 %v1873_v0  ;;  %v1173_v47 = vld [vmem:[#allocation8] ss:$0 sm:$0xff]  ;;  %v472_v53 = vld [vmem:[#allocation7 + $0x108] sm:$0xff]  ;;  %v598_v55 = vld [vmem:[#allocation7 + $0x278] sm:$0xff] }
  0x87   : > { %1334 = vmatpush3.msra.mxu0 %v288_v13  ;;  %1369 = vmatpush3.msra.mxu1 %v383_v18  ;;  %v471_v54 = vld [vmem:[#allocation7 + $0x100] sm:$0xff]  ;;  %v597_v56 = vld [vmem:[#allocation7 + $0x270] sm:$0xff]  ;;  %v596_v57 = vld [vmem:[#allocation7 + $0x268] sm:$0xff] }
  0x88   : > { %1335 = vmatprep.subr.mxu0 %v1873_v0  ;;  %1370 = vmatprep.subr.mxu1 %v1873_v0  ;;  %v595_v58 = vld [vmem:[#allocation7 + $0x260] sm:$0xff]  ;;  %v594_v59 = vld [vmem:[#allocation7 + $0x258] sm:$0xff]  ;;  %v593_v60 = vld [vmem:[#allocation7 + $0x250] sm:$0xff] }
  0x89   : > { %1336 = vmatpush3.msra.mxu0 %v287_v15  ;;  %1371 = vmatpush3.msra.mxu1 %v382_v20  ;;  %v592_v61 = vld [vmem:[#allocation7 + $0x248] sm:$0xff]  ;;  %v591_v62 = vld [vmem:[#allocation7 + $0x240] sm:$0xff]  ;;  %v590_v63 = vld [vmem:[#allocation7 + $0x238] sm:$0xff] }
  0x8a   : > { %1337 = vmatprep.subr.mxu0 %v1873_v0  ;;  %1372 = vmatprep.subr.mxu1 %v1873_v0  ;;  %v589_v1 = vld [vmem:[#allocation7 + $0x230] sm:$0xff]  ;;  %v588_v2 = vld [vmem:[#allocation7 + $0x228] sm:$0xff]  ;;  %v587_v3 = vld [vmem:[#allocation7 + $0x220] sm:$0xff] }
  0x8b   : > { %1338 = vmatpush3.msra.mxu0 %v286_v17  ;;  %1373 = vmatpush3.msra.mxu1 %v381_v22  ;;  %v586_v4 = vld [vmem:[#allocation7 + $0x218] sm:$0xff]  ;;  %v585_v5 = vld [vmem:[#allocation7 + $0x210] sm:$0xff]  ;;  %v1174_v6 = vld [vmem:[#allocation8 + $0x1] ss:$0 sm:$0xff] }
  0x8c   : > { %1339 = vmatprep.subr.mxu0 %v1873_v0  ;;  %1374 = vmatprep.subr.mxu1 %v1873_v0  ;;  %v581_v11 = vld [vmem:[#allocation7 + $0x1f8] sm:$0xff]  ;;  %v580_v12 = vld [vmem:[#allocation7 + $0x1f0] sm:$0xff]  ;;  %v579_v13 = vld [vmem:[#allocation7 + $0x1e8] sm:$0xff] }
  0x8d   : > { %1340 = vmatpush3.msra.mxu0 %v285_v19  ;;  %1375 = vmatpush3.msra.mxu1 %v380_v24  ;;  %v578_v14 = vld [vmem:[#allocation7 + $0x1e0] sm:$0xff]  ;;  %v577_v15 = vld [vmem:[#allocation7 + $0x1d8] sm:$0xff]  ;;  %v576_v16 = vld [vmem:[#allocation7 + $0x1d0] sm:$0xff] }
  0x8e   : > { %1341 = vmatprep.subr.mxu0 %v1873_v0  ;;  %1376 = vmatprep.subr.mxu1 %v1873_v0  ;;  %v575_v17 = vld [vmem:[#allocation7 + $0x1c8] sm:$0xff]  ;;  %v574_v18 = vld [vmem:[#allocation7 + $0x1c0] sm:$0xff]  ;;  %v573_v19 = vld [vmem:[#allocation7 + $0x1b8] sm:$0xff] }
  0x8f   : > { %1342 = vmatpush3.msra.mxu0 %v284_v21  ;;  %1377 = vmatpush3.msra.mxu1 %v379_v26  ;;  %v572_v20 = vld [vmem:[#allocation7 + $0x1b0] sm:$0xff]  ;;  %v571_v21 = vld [vmem:[#allocation7 + $0x1a8] sm:$0xff]  ;;  %v570_v22 = vld [vmem:[#allocation7 + $0x1a0] sm:$0xff] }
  0x90   : > { %1343 = vmatprep.subr.mxu0 %v1873_v0  ;;  %1378 = vmatprep.subr.mxu1 %v1873_v0  ;;  %v568_v24 = vld [vmem:[#allocation7 + $0x190] sm:$0xff]  ;;  %v567_v26 = vld [vmem:[#allocation7 + $0x188] sm:$0xff] }
  0x91   : > { %1344 = vmatpush3.msra.mxu0 %v283_v23  ;;  %1379 = vmatpush3.msra.mxu1 %v378_v28  ;;  %v569_v23 = vld [vmem:[#allocation7 + $0x198] sm:$0xff]  ;;  %v566_v28 = vld [vmem:[#allocation7 + $0x180] sm:$0xff] }
  0x92   : > { %1345 = vmatprep.subr.mxu0 %v1873_v0  ;;  %1380 = vmatprep.subr.mxu1 %v1873_v0 }
  0x93   : > { %1346 = vmatpush3.msra.mxu0 %v282_v25  ;;  %1381 = vmatpush3.msra.mxu1 %v377_v31  ;;  %v584_v25 = vld [vmem:[#allocation7 + $0x208] sm:$0xff] }
  0x94   : > { %1347 = vmatprep.subr.mxu0 %v1873_v0  ;;  %1382 = vmatprep.subr.mxu1 %v1873_v0 }
  0x95   : > { %1348 = vmatpush3.msra.mxu0 %v281_v27  ;;  %1383 = vmatpush3.msra.mxu1 %v376_v32  ;;  %v583_v27 = vld [vmem:[#allocation7 + $0x200] sm:$0xff]  ;;  %v760_v32 = vld [vmem:[#allocation7 + $0x2f8] sm:$0xff] }
  0x96   : > { %1349 = vmatprep.subr.mxu0 %v1873_v0  ;;  %1384 = vmatprep.subr.mxu1 %v1873_v0 }
  0x97   : > { %1350 = vmatpush3.msra.mxu0 %v280_v29  ;;  %1385 = vmatpush3.msra.mxu1 %v375_v33  ;;  %v1175_v29 = vld [vmem:[#allocation8 + $0x2] ss:$0 sm:$0xff] }
  0x98   : > { %1352 = vmatmul.mubr.f32.vlgmr.msra.gmra.mxu0 %v279_v30  ;;  %1389 = vmatprep.subr.mxu0 %v1873_v0 }
  0x99   : > { %1421 = vmatprep.mubr.msk.f32.mxu0 %vm1874_vm0, %v1873_v0  ;;  %1424 = vmatprep.subr.mxu1 %v1873_v0 }
  0x9a   : > { %1390 = vmatpush3.msra.mxu0 %v486_v34  ;;  %v759_v34 = vld [vmem:[#allocation7 + $0x2f0] sm:$0xff] }
  0x9b   : > { %1391 = vmatprep.subr.mxu0 %v1873_v0 }
  0x9c   : > { %1392 = vmatpush3.msra.mxu0 %v485_v35  ;;  %v758_v35 = vld [vmem:[#allocation7 + $0x2e8] sm:$0xff] }
  0x9d   : > { %1393 = vmatprep.subr.mxu0 %v1873_v0 }
  0x9e   : > { %1394 = vmatpush3.msra.mxu0 %v484_v36  ;;  %v757_v36 = vld [vmem:[#allocation7 + $0x2e0] sm:$0xff] }
  0x9f   : > { %1395 = vmatprep.subr.mxu0 %v1873_v0 }
  0xa0   : > { %1396 = vmatpush3.msra.mxu0 %v483_v37  ;;  %v756_v37 = vld [vmem:[#allocation7 + $0x2d8] sm:$0xff] }
  0xa1   : > { %1397 = vmatprep.subr.mxu0 %v1873_v0 }
  0xa2   : > { %1398 = vmatpush3.msra.mxu0 %v482_v38  ;;  %v755_v38 = vld [vmem:[#allocation7 + $0x2d0] sm:$0xff] }
  0xa3   : > { %1399 = vmatprep.subr.mxu0 %v1873_v0 }
  0xa4   : > { %1400 = vmatpush3.msra.mxu0 %v481_v39  ;;  %v754_v39 = vld [vmem:[#allocation7 + $0x2c8] sm:$0xff] }
  0xa5   : > { %1401 = vmatprep.subr.mxu0 %v1873_v0 }
  0xa6   : > { %1402 = vmatpush3.msra.mxu0 %v480_v40  ;;  %v753_v40 = vld [vmem:[#allocation7 + $0x2c0] sm:$0xff] }
  0xa7   : > { %1403 = vmatprep.subr.mxu0 %v1873_v0 }
  0xa8   : > { %1404 = vmatpush3.msra.mxu0 %v479_v41  ;;  %v752_v41 = vld [vmem:[#allocation7 + $0x2b8] sm:$0xff] }
  0xa9   : > { %1405 = vmatprep.subr.mxu0 %v1873_v0 }
  0xaa   : > { %1406 = vmatpush3.msra.mxu0 %v478_v42  ;;  %v751_v42 = vld [vmem:[#allocation7 + $0x2b0] sm:$0xff] }
  0xab   : > { %1407 = vmatprep.subr.mxu0 %v1873_v0 }
  0xac   : > { %1408 = vmatpush3.msra.mxu0 %v477_v43  ;;  %v750_v43 = vld [vmem:[#allocation7 + $0x2a8] sm:$0xff] }
  0xad   : > { %1409 = vmatprep.subr.mxu0 %v1873_v0 }
  0xae   : > { %1410 = vmatpush3.msra.mxu0 %v476_v44  ;;  %v749_v44 = vld [vmem:[#allocation7 + $0x2a0] sm:$0xff] }
  0xaf   : > { %1411 = vmatprep.subr.mxu0 %v1873_v0 }
  0xb0   : > { %1412 = vmatpush3.msra.mxu0 %v475_v45  ;;  %v748_v45 = vld [vmem:[#allocation7 + $0x298] sm:$0xff] }
  0xb1   : > { %1413 = vmatprep.subr.mxu0 %v1873_v0 }
  0xb2   : > { %1414 = vmatpush3.msra.mxu0 %v474_v46  ;;  %v747_v46 = vld [vmem:[#allocation7 + $0x290] sm:$0xff] }
  0xb3   : > { %1415 = vmatprep.subr.mxu0 %v1873_v0 }
  0xb4   : > { %1416 = vmatpush3.msra.mxu0 %v473_v52  ;;  %v853_v52 = vld [vmem:[#allocation7 + $0x360] sm:$0xff] }
  0xb5   : > { %1417 = vmatprep.subr.mxu0 %v1873_v0 }
  0xb6   : > { %1418 = vmatpush3.msra.mxu0 %v472_v53  ;;  %v852_v53 = vld [vmem:[#allocation7 + $0x358] sm:$0xff] }
  0xb7   : > { %1419 = vmatprep.subr.mxu0 %v1873_v0 }
  0xb8   : > { %1420 = vmatpush3.msra.mxu0 %v471_v54  ;;  %v851_v54 = vld [vmem:[#allocation7 + $0x350] sm:$0xff] }
  0xb9   : > { %1459 = vmatprep.subr.mxu0 %v1873_v0 }
 0x158   : > { %v369_v48 = vpop.f32.mrf.mxu0 }
 0x159   : > { %v370_v49 = vadd.f32 %v1173_v47, %v369_v48  ;;  %v746_v47 = vld [vmem:[#allocation7 + $0x288] sm:$0xff]  ;;  %v745_v48 = vld [vmem:[#allocation7 + $0x280] sm:$0xff] }
 0x15a   : > { %v1353_v50 = vpop.f32.mrf.mxu0 }
 0x15b   : > { %v373_v51 = vmax.f32 %v370_v49, 0.0  ;;  %v856_v49 = vld [vmem:[#allocation7 + $0x378] sm:$0xff]  ;;  %v855_v50 = vld [vmem:[#allocation7 + $0x370] sm:$0xff] }
 0x15d   : > { %1387 = vmatmul.mubr.f32.vlgmr.msra.gmra.mxu1 %v373_v51  ;;  %v854_v51 = vld [vmem:[#allocation7 + $0x368] sm:$0xff] }
 0x15e   : > { %1456 = vmatprep.mubr.msk.f32.mxu1 %vm1874_vm0, %v1873_v0  ;;  %1425 = vmatpush3.msra.mxu1 %v598_v55  ;;  %v850_v55 = vld [vmem:[#allocation7 + $0x348] sm:$0xff] }
 0x15f   : > { %1426 = vmatprep.subr.mxu1 %v1873_v0 }
 0x160   : > { %1427 = vmatpush3.msra.mxu1 %v597_v56  ;;  %v849_v56 = vld [vmem:[#allocation7 + $0x340] sm:$0xff] }
 0x161   : > { %1428 = vmatprep.subr.mxu1 %v1873_v0 }
 0x162   : > { %1429 = vmatpush3.msra.mxu1 %v596_v57  ;;  %v848_v57 = vld [vmem:[#allocation7 + $0x338] sm:$0xff] }
 0x163   : > { %1430 = vmatprep.subr.mxu1 %v1873_v0 }
 0x164   : > { %1431 = vmatpush3.msra.mxu1 %v595_v58  ;;  %v847_v58 = vld [vmem:[#allocation7 + $0x330] sm:$0xff] }
 0x165   : > { %1432 = vmatprep.subr.mxu1 %v1873_v0 }
 0x166   : > { %1433 = vmatpush3.msra.mxu1 %v594_v59  ;;  %v846_v59 = vld [vmem:[#allocation7 + $0x328] sm:$0xff] }
 0x167   : > { %1434 = vmatprep.subr.mxu1 %v1873_v0 }
 0x168   : > { %1435 = vmatpush3.msra.mxu1 %v593_v60  ;;  %v845_v60 = vld [vmem:[#allocation7 + $0x320] sm:$0xff] }
 0x169   : > { %1436 = vmatprep.subr.mxu1 %v1873_v0 }
 0x16a   : > { %1437 = vmatpush3.msra.mxu1 %v592_v61  ;;  %v844_v61 = vld [vmem:[#allocation7 + $0x318] sm:$0xff] }
 0x16b   : > { %1438 = vmatprep.subr.mxu1 %v1873_v0 }
 0x16c   : > { %1439 = vmatpush3.msra.mxu1 %v591_v62 }
 0x16d   : > { %1440 = vmatprep.subr.mxu1 %v1873_v0 }
 0x16e   : > { %1441 = vmatpush3.msra.mxu1 %v590_v63 }
 0x16f   : > { %1442 = vmatprep.subr.mxu1 %v1873_v0 }
 0x170   : > { %1443 = vmatpush3.msra.mxu1 %v589_v1 }
 0x171   : > { %1444 = vmatprep.subr.mxu1 %v1873_v0 }
 0x172   : > { %1445 = vmatpush3.msra.mxu1 %v588_v2 }
 0x173   : > { %1446 = vmatprep.subr.mxu1 %v1873_v0 }
 0x174   : > { %1447 = vmatpush3.msra.mxu1 %v587_v3 }
 0x175   : > { %1448 = vmatprep.subr.mxu1 %v1873_v0 }
 0x176   : > { %1449 = vmatpush3.msra.mxu1 %v586_v4 }
 0x177   : > { %1450 = vmatprep.subr.mxu1 %v1873_v0 }
 0x178   : > { %1451 = vmatpush3.msra.mxu1 %v585_v5  ;;  %v672_v5 = vld [vmem:[%s241_s11] sm:$0xff] }
 0x179   : > { %1452 = vmatprep.subr.mxu1 %v1873_v0 }
 0x17a   : > { %1453 = vmatpush3.msra.mxu1 %v584_v25  ;;  %v1176_v25 = vld [vmem:[#allocation8 + $0x3] ss:$0 sm:$0xff] }
 0x17b   : > { %1454 = vmatprep.subr.mxu1 %v1873_v0 }
 0x17c   : > { %1455 = vmatpush3.msra.mxu1 %v583_v27 }
 0x17d   : > { %1494 = vmatprep.subr.mxu1 %v1873_v0 }
 0x21d   : > { %v465_v7 = vpop.f32.mrf.mxu1 }
 0x21e   : > { %v466_v8 = vadd.f32 %v1174_v6, %v465_v7 }
 0x21f   : > { %v1388_v9 = vpop.f32.mrf.mxu1 }
 0x220   : > { %v469_v10 = vmax.f32 %v466_v8, 0.0  ;;  %v843_v9 = vld [vmem:[#allocation7 + $0x310] sm:$0xff] }
 0x222   : > { %1422 = vmatmul.mubr.f32.vlgmr.msra.gmra.mxu0 %v469_v10  ;;  %v842_v10 = vld [vmem:[#allocation7 + $0x308] sm:$0xff] }
 0x223   : > { %1460 = vmatpush3.msra.mxu0 %v581_v11  ;;  %1491 = vmatprep.mubr.msk.f32.mxu0 %vm1874_vm0, %v1873_v0  ;;  %v841_v11 = vld [vmem:[#allocation7 + $0x300] sm:$0xff] }
 0x224   : > { %1461 = vmatprep.subr.mxu0 %v1873_v0 }
 0x225   : > { %1462 = vmatpush3.msra.mxu0 %v580_v12  ;;  %v952_v12 = vld [vmem:[#allocation7 + $0x3f8] sm:$0xff] }
 0x226   : > { %1463 = vmatprep.subr.mxu0 %v1873_v0 }
 0x227   : > { %1464 = vmatpush3.msra.mxu0 %v579_v13  ;;  %v951_v13 = vld [vmem:[#allocation7 + $0x3f0] sm:$0xff] }
 0x228   : > { %1465 = vmatprep.subr.mxu0 %v1873_v0 }
 0x229   : > { %1466 = vmatpush3.msra.mxu0 %v578_v14  ;;  %v950_v14 = vld [vmem:[#allocation7 + $0x3e8] sm:$0xff] }
 0x22a   : > { %1467 = vmatprep.subr.mxu0 %v1873_v0 }
 0x22b   : > { %1468 = vmatpush3.msra.mxu0 %v577_v15  ;;  %v949_v15 = vld [vmem:[#allocation7 + $0x3e0] sm:$0xff] }
 0x22c   : > { %1469 = vmatprep.subr.mxu0 %v1873_v0 }
 0x22d   : > { %1470 = vmatpush3.msra.mxu0 %v576_v16  ;;  %v948_v16 = vld [vmem:[#allocation7 + $0x3d8] sm:$0xff] }
 0x22e   : > { %1471 = vmatprep.subr.mxu0 %v1873_v0 }
 0x22f   : > { %1472 = vmatpush3.msra.mxu0 %v575_v17  ;;  %v947_v17 = vld [vmem:[#allocation7 + $0x3d0] sm:$0xff] }
 0x230   : > { %1473 = vmatprep.subr.mxu0 %v1873_v0 }
 0x231   : > { %1474 = vmatpush3.msra.mxu0 %v574_v18  ;;  %v946_v18 = vld [vmem:[#allocation7 + $0x3c8] sm:$0xff] }
 0x232   : > { %1475 = vmatprep.subr.mxu0 %v1873_v0 }
 0x233   : > { %1476 = vmatpush3.msra.mxu0 %v573_v19  ;;  %v945_v19 = vld [vmem:[#allocation7 + $0x3c0] sm:$0xff] }
 0x234   : > { %1477 = vmatprep.subr.mxu0 %v1873_v0 }
 0x235   : > { %1478 = vmatpush3.msra.mxu0 %v572_v20  ;;  %v944_v20 = vld [vmem:[#allocation7 + $0x3b8] sm:$0xff] }
 0x236   : > { %1479 = vmatprep.subr.mxu0 %v1873_v0 }
 0x237   : > { %1480 = vmatpush3.msra.mxu0 %v571_v21  ;;  %v943_v21 = vld [vmem:[#allocation7 + $0x3b0] sm:$0xff] }
 0x238   : > { %1481 = vmatprep.subr.mxu0 %v1873_v0 }
 0x239   : > { %1482 = vmatpush3.msra.mxu0 %v570_v22  ;;  %v942_v22 = vld [vmem:[#allocation7 + $0x3a8] sm:$0xff] }
 0x23a   : > { %1483 = vmatprep.subr.mxu0 %v1873_v0 }
 0x23b   : > { %1484 = vmatpush3.msra.mxu0 %v569_v23  ;;  %v941_v23 = vld [vmem:[#allocation7 + $0x3a0] sm:$0xff] }
 0x23c   : > { %1485 = vmatprep.subr.mxu0 %v1873_v0 }
 0x23d   : > { %1486 = vmatpush3.msra.mxu0 %v568_v24  ;;  %v940_v24 = vld [vmem:[#allocation7 + $0x398] sm:$0xff] }
 0x23e   : > { %1487 = vmatprep.subr.mxu0 %v1873_v0 }
 0x23f   : > { %1488 = vmatpush3.msra.mxu0 %v567_v26 }
 0x240   : > { %1489 = vmatprep.subr.mxu0 %v1873_v0 }
 0x241   : > { %1490 = vmatpush3.msra.mxu0 %v566_v28 }
 0x242   : > { %1529 = vmatprep.subr.mxu0 %v1873_v0 }
 0x2e2   : > { %v561_v30 = vpop.f32.mrf.mxu0 }
 0x2e3   : > { %v562_v31 = vadd.f32 %v1175_v29, %v561_v30  ;;  %v939_v30 = vld [vmem:[#allocation7 + $0x390] sm:$0xff] }
 0x2e4   : > { %v1423_v33 = vpop.f32.mrf.mxu0 }
 0x2e5   : > { %1457 = vmatmul.mubr.f32.vlgmr.msra.gmra.mxu1 %v562_v31  ;;  %1492 = vmatmul.mubr.f32.vlgmr.msra.gmra.mxu0 %v562_v31  ;;  %v938_v31 = vld [vmem:[#allocation7 + $0x388] sm:$0xff]  ;;  %v1177_v33 = vld [vmem:[#allocation8 + $0x4] ss:$0 sm:$0xff] }
 0x2e6   : > { %1495 = vmatpush3.msra.mxu1 %v760_v32  ;;  %1526 = vmatprep.mubr.msk.f32.mxu1 %vm1874_vm0, %v1873_v0  ;;  %v937_v32 = vld [vmem:[#allocation7 + $0x380] sm:$0xff] }
 0x2e7   : > { %1496 = vmatprep.subr.mxu1 %v1873_v0  ;;  %1561 = vmatprep.mubr.msk.f32.mxu0 %vm1874_vm0, %v1873_v0 }
 0x2e8   : > { %1497 = vmatpush3.msra.mxu1 %v759_v34  ;;  %1530 = vmatpush3.msra.mxu0 %v856_v49 }
 0x2e9   : > { %1498 = vmatprep.subr.mxu1 %v1873_v0  ;;  %1531 = vmatprep.subr.mxu0 %v1873_v0 }
 0x2ea   : > { %1499 = vmatpush3.msra.mxu1 %v758_v35  ;;  %1532 = vmatpush3.msra.mxu0 %v855_v50 }
 0x2eb   : > { %1500 = vmatprep.subr.mxu1 %v1873_v0  ;;  %1533 = vmatprep.subr.mxu0 %v1873_v0 }
 0x2ec   : > { %1501 = vmatpush3.msra.mxu1 %v757_v36  ;;  %1534 = vmatpush3.msra.mxu0 %v854_v51 }
 0x2ed   : > { %1502 = vmatprep.subr.mxu1 %v1873_v0  ;;  %1535 = vmatprep.subr.mxu0 %v1873_v0 }
 0x2ee   : > { %1503 = vmatpush3.msra.mxu1 %v756_v37  ;;  %1536 = vmatpush3.msra.mxu0 %v853_v52 }
 0x2ef   : > { %1504 = vmatprep.subr.mxu1 %v1873_v0  ;;  %1537 = vmatprep.subr.mxu0 %v1873_v0 }
 0x2f0   : > { %1505 = vmatpush3.msra.mxu1 %v755_v38  ;;  %1538 = vmatpush3.msra.mxu0 %v852_v53  ;;  %v1178_v38 = vld [vmem:[#allocation8 + $0x5] ss:$0 sm:$0xff] }
 0x2f1   : > { %1506 = vmatprep.subr.mxu1 %v1873_v0  ;;  %1539 = vmatprep.subr.mxu0 %v1873_v0 }
 0x2f2   : > { %1507 = vmatpush3.msra.mxu1 %v754_v39  ;;  %1540 = vmatpush3.msra.mxu0 %v851_v54 }
 0x2f3   : > { %1508 = vmatprep.subr.mxu1 %v1873_v0  ;;  %1541 = vmatprep.subr.mxu0 %v1873_v0 }
 0x2f4   : > { %1509 = vmatpush3.msra.mxu1 %v753_v40  ;;  %1542 = vmatpush3.msra.mxu0 %v850_v55 }
 0x2f5   : > { %1510 = vmatprep.subr.mxu1 %v1873_v0  ;;  %1543 = vmatprep.subr.mxu0 %v1873_v0 }
 0x2f6   : > { %1511 = vmatpush3.msra.mxu1 %v752_v41  ;;  %1544 = vmatpush3.msra.mxu0 %v849_v56 }
 0x2f7   : > { %1512 = vmatprep.subr.mxu1 %v1873_v0  ;;  %1545 = vmatprep.subr.mxu0 %v1873_v0 }
 0x2f8   : > { %1513 = vmatpush3.msra.mxu1 %v751_v42  ;;  %1546 = vmatpush3.msra.mxu0 %v848_v57 }
 0x2f9   : > { %1514 = vmatprep.subr.mxu1 %v1873_v0  ;;  %1547 = vmatprep.subr.mxu0 %v1873_v0 }
 0x2fa   : > { %1515 = vmatpush3.msra.mxu1 %v750_v43  ;;  %1548 = vmatpush3.msra.mxu0 %v847_v58 }
 0x2fb   : > { %1516 = vmatprep.subr.mxu1 %v1873_v0  ;;  %1549 = vmatprep.subr.mxu0 %v1873_v0 }
 0x2fc   : > { %1517 = vmatpush3.msra.mxu1 %v749_v44  ;;  %1550 = vmatpush3.msra.mxu0 %v846_v59 }
 0x2fd   : > { %1518 = vmatprep.subr.mxu1 %v1873_v0  ;;  %1551 = vmatprep.subr.mxu0 %v1873_v0 }
 0x2fe   : > { %1519 = vmatpush3.msra.mxu1 %v748_v45  ;;  %1552 = vmatpush3.msra.mxu0 %v845_v60 }
 0x2ff   : > { %1520 = vmatprep.subr.mxu1 %v1873_v0  ;;  %1553 = vmatprep.subr.mxu0 %v1873_v0 }
 0x300   : > { %1521 = vmatpush3.msra.mxu1 %v747_v46  ;;  %1554 = vmatpush3.msra.mxu0 %v844_v61 }
 0x301   : > { %1522 = vmatprep.subr.mxu1 %v1873_v0  ;;  %1555 = vmatprep.subr.mxu0 %v1873_v0 }
 0x302   : > { %1523 = vmatpush3.msra.mxu1 %v746_v47  ;;  %1556 = vmatpush3.msra.mxu0 %v843_v9 }
 0x303   : > { %1524 = vmatprep.subr.mxu1 %v1873_v0  ;;  %1557 = vmatprep.subr.mxu0 %v1873_v0 }
 0x304   : > { %1525 = vmatpush3.msra.mxu1 %v745_v48  ;;  %1558 = vmatpush3.msra.mxu0 %v842_v10 }
 0x305   : > { %1564 = vmatprep.subr.mxu1 %v1873_v0  ;;  %1559 = vmatprep.subr.mxu0 %v1873_v0 }
 0x306   : > { %1560 = vmatpush3.msra.mxu0 %v841_v11 }
 0x3a5   : > { %v665_v62 = vpop.f32.mrf.mxu1  ;;  %v740_v63 = vpop.f32.mrf.mxu0 }
 0x3a6   : > { %v669_v1 = vmul.f32 0.5, %v665_v62 }
 0x3a7   : > { %v1458_v2 = vpop.f32.mrf.mxu1  ;;  %v1493_v3 = vpop.f32.mrf.mxu0 }
 0x3a8   : > { %v670_v4 = vmul.f32 1.442695, %v669_v1 }
 0x3aa   : > { %1677 = vpow2.f32 %v670_v4 }
 0x3b7   : > { %v1678_v6 = vpop.eup %1677 }
 0x3b8   : > { %v673_v7 = vmul.f32 %v1678_v6, %v672_v5 }
 0x3ba   : > { %v741_v8 = vadd.f32 %v740_v63, %v673_v7 }
 0x3bc   : > { %1527 = vmatmul.mubr.f32.vlgmr.msra.gmra.mxu1 %v741_v8 }
 0x3bd   : > { %1596 = vmatprep.mubr.msk.f32.mxu1 %vm1874_vm0, %v1873_v0  ;;  %1565 = vmatpush3.msra.mxu1 %v952_v12 }
 0x3be   : > { %1566 = vmatprep.subr.mxu1 %v1873_v0 }
 0x3bf   : > { %1567 = vmatpush3.msra.mxu1 %v951_v13 }
 0x3c0   : > { %1568 = vmatprep.subr.mxu1 %v1873_v0 }
 0x3c1   : > { %1569 = vmatpush3.msra.mxu1 %v950_v14 }
 0x3c2   : > { %1570 = vmatprep.subr.mxu1 %v1873_v0 }
 0x3c3   : > { %1571 = vmatpush3.msra.mxu1 %v949_v15 }
 0x3c4   : > { %1572 = vmatprep.subr.mxu1 %v1873_v0 }
 0x3c5   : > { %1573 = vmatpush3.msra.mxu1 %v948_v16 }
 0x3c6   : > { %1574 = vmatprep.subr.mxu1 %v1873_v0 }
 0x3c7   : > { %1575 = vmatpush3.msra.mxu1 %v947_v17 }
 0x3c8   : > { %1576 = vmatprep.subr.mxu1 %v1873_v0 }
 0x3c9   : > { %1577 = vmatpush3.msra.mxu1 %v946_v18 }
 0x3ca   : > { %1578 = vmatprep.subr.mxu1 %v1873_v0 }
 0x3cb   : > { %1579 = vmatpush3.msra.mxu1 %v945_v19 }
 0x3cc   : > { %1580 = vmatprep.subr.mxu1 %v1873_v0 }
 0x3cd   : > { %1581 = vmatpush3.msra.mxu1 %v944_v20 }
 0x3ce   : > { %1582 = vmatprep.subr.mxu1 %v1873_v0 }
 0x3cf   : > { %1583 = vmatpush3.msra.mxu1 %v943_v21 }
 0x3d0   : > { %1584 = vmatprep.subr.mxu1 %v1873_v0 }
 0x3d1   : > { %1585 = vmatpush3.msra.mxu1 %v942_v22 }
 0x3d2   : > { %1586 = vmatprep.subr.mxu1 %v1873_v0 }
 0x3d3   : > { %1587 = vmatpush3.msra.mxu1 %v941_v23 }
 0x3d4   : > { %1588 = vmatprep.subr.mxu1 %v1873_v0 }
 0x3d5   : > { %1589 = vmatpush3.msra.mxu1 %v940_v24 }
 0x3d6   : > { %1590 = vmatprep.subr.mxu1 %v1873_v0 }
 0x3d7   : > { %1591 = vmatpush3.msra.mxu1 %v939_v30 }
 0x3d8   : > { %1592 = vmatprep.subr.mxu1 %v1873_v0 }
 0x3d9   : > { %1593 = vmatpush3.msra.mxu1 %v938_v31 }
 0x3da   : > { %1594 = vmatprep.subr.mxu1 %v1873_v0 }
 0x3db   : > { %1595 = vmatpush3.msra.mxu1 %v937_v32 }
 0x47c   : > { %v835_v26 = vpop.f32.mrf.mxu1 }
 0x47d   : > { %v836_v27 = vadd.f32 %v1176_v25, %v835_v26 }
 0x47e   : > { %v1528_v28 = vpop.f32.mrf.mxu1 }
 0x47f   : > { %v839_v29 = vmax.f32 %v836_v27, 0.0 }
 0x481   : > { %1562 = vmatmul.mubr.f32.vlgmr.msra.gmra.mxu0 %v839_v29 }
 0x541   : > { %v931_v34 = vpop.f32.mrf.mxu0 }
 0x542   : > { %v932_v35 = vadd.f32 %v1177_v33, %v931_v34 }
 0x543   : > { %v1563_v36 = vpop.f32.mrf.mxu0 }
 0x544   : > { %v935_v37 = vmax.f32 %v932_v35, 0.0 }
 0x546   : > { %1597 = vmatmul.mubr.f32.vlgmr.msra.gmra.mxu1 %v935_v37 }
 0x606   : > { %v1027_v39 = vpop.f32.mrf.mxu1 }
 0x607   : > { %v1028_v40 = vadd.f32 %v1178_v38, %v1027_v39 }
 0x608   : > { %v1598_v0 = vpop.f32.mrf.mxu1 }
 0x609   : > { %1031 = vst [vmem:[%s278_s20] sm:$0xff] %v1028_v40 }
 0x60a   : > { %1800 = shalt.err (!%p1797_p4)
}
 0x60b   : > { %s1801_s12 = scalar_lea.hbm %s2238_s10, 128  ;;  %s1805_s6 = scalar_lea.hbm %s2278_s4, 384 }
 0x60c   : > { %p1802_p0 = scmp.ne.s32.totalorder %s2238_s10, %s1801_s12  ;;  %p1806_p10 = scmp.lt.s32.totalorder %s2238_s10, %s2278_s4 }
 0x60d   : > { %p1807_p2 = scmp.lt.s32.totalorder %s1805_s6, %s1801_s12 }
 0x60e   : > { %p1803_p13 = pnand %p1802_p0, %p2298_p5 }
 0x60f   : > { %p1808_p6 = por %p1807_p2, %p1806_p10 }
 0x610   : > { %p1804_p8 = pneg %p1803_p13 }
 0x612   : > { %p1809_p11 = pnand %p1808_p6, %p1804_p8 }
 0x614   : > { %1812 = shalt.err (!%p1809_p11)
}
 0x615   : > { %1611 = dma.vmem_to_hbm [thread:$0]  (%p2298_p5), %s1047_s30, 128, %s2238_s10, %s1033_s29  }
 0x616 PF: > { %p1636_p9 = scmp.ge.s32.totalorder %s1863_s18, 2  ;;  %s1058_s8 = sand.u32 1, %s1851_s15  }
 0x617   : > { %p2299_p12 = scmp.ne.s32.totalorder %s2285_s22, 0  ;;  %s1059_s11 = scalar_lea.sflag [#allocation4], %s1058_s8 }
 0x619   : > { %p1628_p3 = pnand %p1636_p9, %p2299_p12 }
 0x61b   : > { %p1629_p1 = pneg %p1628_p3 }
 0x61d   : > { %1846 = dma.done.wait (%p1629_p1), %s1059_s11, 128  }
 0x61e   : > { %1848 = vsyncadd (%p1629_p1), %s1059_s11, 4294967168  ;;  %p21_p7 = scmp.ge.s32.totalorder %s1972_s13, 5   ;;  %s2300_s15 = smov %s1855_s16 }
 0x61f   : > { %s2301_s16 = smov %s1859_s17  ;;  %s2302_s17 = smov %s1981_s24 }
 0x620   : > { %s2303_s18 = smov %s1972_s13  ;;  %23 = sbr.rel (!%p21_p7) target bundleno = 10 (0xa), region = 114 }
 0x625   :  { %1064 = vsyncpa [#allocation3], 1 }
 0x626   :  { %1066 = vsyncpa [#allocation3 + $0x1], 1 }
 0x627   :  { %1067 = vsyncpa [#allocation6], 1 }
 0x628   :  { %1069 = vsyncpa [#allocation6 + $0x1], 1 }
 0x629   :  { %1070 = vsyncpa [#allocation9], 1 }
 0x62a   :  { %1071 = vsyncpa [#allocation4], 1 }
 0x62b   :  { %1073 = vsyncpa [#allocation4 + $0x1], 1 }

</bundles_post_ra>
